<compile_context>
chip_gen: v5e
topology: v5e:2x2
jax: 0.10.0
libtpu: 0.0.40
codegen_flags: <defaults>
</compile_context>

<pallas_src>
import functools

import jax
import jax.numpy as jnp
from jax import lax
from jax.experimental import pallas as pl
from jax.experimental.pallas import tpu as pltpu


def _round_up(x, m):
    return (x + m - 1) // m * m


def _ceil_div(a, b):
    return -(-a // b)


# ---------------------------------------------------------------------------
# Kernel
# ---------------------------------------------------------------------------
def _critic_kernel(num_layer, x_ref, *refs):
    """refs = (w1, b1,                         # first hidden layer
               (w_i, b_i) * (num_layer - 1),   # remaining hidden layers
               w_out_row, b_out,               # final layer ((1, Hp) bf16, (1, 1) f32)
               out_ref)                        # (1, tb) f32, lane-dense
    """
    out_ref = refs[-1]
    p = refs[:-1]

    w1, b1 = p[0], p[1]
    # x_ref is already bf16 (cast in the wrapper): one dense MXU pass for layer 1.
    h = jnp.dot(x_ref[...], w1[...], preferred_element_type=jnp.float32) + b1[...]
    h = jnp.maximum(h, 0.0)

    idx = 2
    for _ in range(num_layer - 1):
        w, b = p[idx], p[idx + 1]
        idx += 2
        h = jnp.dot(h.astype(jnp.bfloat16), w[...],
                    preferred_element_type=jnp.float32) + b[...]
        h = jnp.maximum(h, 0.0)

    # Final (H -> 1) layer, computed transposed so the store is lane-dense:
    #   q^T = w_out_row @ h^T   -> (1, tb)   (MXU with contraction on H)
    w_out_row, b_out = p[idx], p[idx + 1]
    q = lax.dot_general(w_out_row[...], h.astype(jnp.bfloat16),
                        dimension_numbers=(((1,), (1,)), ((), ())),
                        preferred_element_type=jnp.float32)
    out_ref[...] = (q + b_out[...]).astype(out_ref.dtype)


# ---------------------------------------------------------------------------
# Parameter construction / preparation
# ---------------------------------------------------------------------------
def init_critic_params(key, obs_dim, act_dim, hid_dim, num_layer):
    """PyTorch-equivalent init (W stored as (in, out)):
       hidden Linear: W ~ U(-1/sqrt(hid), 1/sqrt(hid)), b = 0
       output Linear: W ~ U(-0.003, 0.003),             b = 0
    """
    params = []
    unit = obs_dim + act_dim
    bound = 1.0 / (float(hid_dim) ** 0.5)
    for _ in range(num_layer):
        key, sub = jax.random.split(key)
        w = jax.random.uniform(sub, (unit, hid_dim), jnp.float32, -bound, bound)
        b = jnp.zeros((1, hid_dim), jnp.float32)
        params.append((w, b))
        unit = hid_dim
    key, sub = jax.random.split(key)
    w_out = jax.random.uniform(sub, (hid_dim, 1), jnp.float32, -0.003, 0.003)
    b_out = jnp.zeros((1, 1), jnp.float32)
    params.append((w_out, b_out))
    return params


def prepare_critic_params(params, *, lane=128):
    """Pad hid_dim to a multiple of 128 lanes (zero fill), cast matmul weights
    to bf16 and reshape the output weight into a (1, Hp) bf16 row for the
    transposed final matmul.  W1 stays unsplit: the wrapper feeds the kernel a
    single concatenated bf16 (B, obs_dim + act_dim) input."""
    (w1, b1) = params[0]
    mids = params[1:-1]
    (w_out, b_out) = params[-1]
    hid = w1.shape[1]
    hid_p = _round_up(hid, lane)

    def pad_cols(a):
        return jnp.pad(a, ((0, 0), (0, hid_p - a.shape[1])))

    prepped = [pad_cols(w1).astype(jnp.bfloat16),          # (feat, Hp) bf16
               pad_cols(b1).astype(jnp.float32)]           # (1, Hp)   f32
    for (w, b) in mids:
        wp = jnp.pad(w, ((0, hid_p - w.shape[0]), (0, hid_p - w.shape[1])))
        prepped += [wp.astype(jnp.bfloat16), pad_cols(b).astype(jnp.float32)]
    w_row = jnp.pad(w_out.reshape(1, -1), ((0, 0), (0, hid_p - w_out.shape[0])))
    prepped += [w_row.astype(jnp.bfloat16),                 # (1, Hp) bf16
                b_out.reshape(1, 1).astype(jnp.float32)]    # (1, 1)  f32
    return prepped, hid_p


# ---------------------------------------------------------------------------
# Tiling / forward wrapper
# ---------------------------------------------------------------------------
def _choose_batch_tile(B, block_b, hid_p, feat):
    """Pick (tb, num_tiles): lane-dense tiles (multiples of 128), last tile
    mostly full, >=2 (even) grid steps when the batch is large enough so the
    parallel grid axis can use both v7x TensorCores, and a per-step footprint
    that stays well inside a 64 MiB VMEM budget."""
    block_b = max(128, (int(block_b) // 128) * 128)
    # Per-row VMEM bytes per grid step: h (f32) + bf16 copy of h + double-
    # buffered bf16 input row + double-buffered f32 output element.
    per_row = hid_p * 4 + hid_p * 2 + 2 * feat * 2 + 2 * 4
    budget = 24 << 20
    cap = max(128, (budget // per_row) // 128 * 128)
    block_b = min(block_b, cap)

    nt = _ceil_div(B, block_b)
    if nt == 1 and B > 256:
        nt = 2                      # let v7x shard the batch across both TCs
    if nt > 1 and nt % 2:
        nt += 1                     # even step count -> balanced megacore split
    tb = _round_up(_ceil_div(B, nt), 128)
    return tb, nt


def critic_forward(obs, action, prepped_params, *, num_layer, block_b=2048):
    """prepped_params: output of prepare_critic_params."""
    B = obs.shape[0]
    feat = obs.shape[1] + action.shape[1]
    hid_p = prepped_params[1].shape[1]

    # Fused concat + bf16 cast in the wrapper (cheap, fusable XLA op); the
    # kernel then streams one dense bf16 (tb, feat) tile per grid step.
    x = jnp.concatenate([obs, action], axis=-1).astype(jnp.bfloat16)

    tb, nt = _choose_batch_tile(B, block_b, hid_p, feat)
    b_pad = nt * tb
    if b_pad != B:
        x = jnp.pad(x, ((0, b_pad - B), (0, 0)))

    grid = (nt,)
    in_specs = (
        [pl.BlockSpec((tb, feat), lambda i: (i, 0))]
        + [pl.BlockSpec(p.shape, lambda i: (0, 0)) for p in prepped_params]
    )
    # Lane-dense output: (1, b_pad) array, (1, tb) block per grid step.
    out_spec = pl.BlockSpec((1, tb), lambda i: (0, i))

    params_bytes = sum(int(p.size) * p.dtype.itemsize for p in prepped_params)
    per_step_bytes = (2 * tb * feat * 2          # double-buffered input tile
                      + 2 * tb * 4               # double-buffered output tile
                      + tb * hid_p * (4 + 2))    # h (f32) + bf16 cast copy
    vmem_limit = int(min(64 << 20,
                         max(2 * params_bytes + 2 * per_step_bytes, 16 << 20)))

    flops = 2 * b_pad * (feat * hid_p + (num_layer - 1) * hid_p * hid_p + hid_p)
    bytes_accessed = int(int(x.size) * x.dtype.itemsize
                         + b_pad * 4
                         + params_bytes)

    kernel = functools.partial(_critic_kernel, num_layer)
    out = pl.pallas_call(
        kernel,
        out_shape=jax.ShapeDtypeStruct((1, b_pad), jnp.float32),
        grid=grid,
        in_specs=in_specs,
        out_specs=out_spec,
        compiler_params=pltpu.CompilerParams(
            dimension_semantics=("parallel",),
            vmem_limit_bytes=vmem_limit),
        cost_estimate=pl.CostEstimate(
            flops=flops, transcendentals=0, bytes_accessed=bytes_accessed),
    )(x, *prepped_params)
    return out[0, :B].reshape(B, 1)


# ---------------------------------------------------------------------------
# Self-test
# ---------------------------------------------------------------------------
if __name__ == "__main__":
    batch = 8
    obs_dim = 12
    act_dim = 4
    hid_dim = 32
    num_layer = 2

    key = jax.random.PRNGKey(0)
    key, k_obs, k_act, k_par = jax.random.split(key, 4)

    obs = jax.random.normal(k_obs, (batch, obs_dim), jnp.float32)
    action = jax.random.normal(k_act, (batch, act_dim), jnp.float32)

    raw_params = init_critic_params(k_par, obs_dim, act_dim, hid_dim, num_layer)
    prepped, hid_p = prepare_critic_params(raw_params)

    q_val = critic_forward(obs, action, prepped, num_layer=num_layer)
    q_val = jax.block_until_ready(q_val)

    # Reference in plain JAX mirroring the kernel's compute path
    # (bf16 matmul operands, f32 accumulation, f32 bias/ReLU).
    def f32(a):
        return a.astype(jnp.float32)

    x_ref = jnp.concatenate([obs, action], axis=-1).astype(jnp.bfloat16)
    w1, b1 = prepped[0], prepped[1]
    h = f32(x_ref) @ f32(w1) + b1
    h = jnp.maximum(h, 0.0)
    idx = 2
    for _ in range(num_layer - 1):
        w, b = prepped[idx], prepped[idx + 1]
        idx += 2
        h = jnp.maximum(f32(h.astype(jnp.bfloat16)) @ f32(w) + b, 0.0)
    w_row, b_out = prepped[idx], prepped[idx + 1]
    q_ref = f32(h.astype(jnp.bfloat16)) @ f32(w_row).T + b_out

    assert q_val.shape == (batch, 1)
    assert jnp.allclose(q_val, q_ref, atol=1e-4, rtol=1e-4), (
        float(jnp.max(jnp.abs(q_val - q_ref))))
    print("KERNEL_OK")
</pallas_src>

<mosaic_0001>
module attributes {stable_mosaic.version = 11 : i64} {
  func.func @_critic_kernel(%arg0: i32, %arg1: memref<128x16xbf16, #tpu.memory_space<vmem>>, %arg2: memref<16x128xbf16, #tpu.memory_space<vmem>>, %arg3: memref<1x128xf32, #tpu.memory_space<vmem>>, %arg4: memref<128x128xbf16, #tpu.memory_space<vmem>>, %arg5: memref<1x128xf32, #tpu.memory_space<vmem>>, %arg6: memref<1x128xbf16, #tpu.memory_space<vmem>>, %arg7: memref<1x1xf32, #tpu.memory_space<vmem>>, %arg8: memref<1x128xf32, #tpu.memory_space<vmem>>) attributes {dimension_semantics = [#tpu.dimension_semantics<parallel>], iteration_bounds = array<i64: 1>, scalar_prefetch = 0 : i64, scratch_operands = 0 : i64, tpu.core_type = #tpu.core_type<tc>, window_params = [{transform_indices = @transform_0, window_bounds = array<i64: 128, 16>}, {pipeline_mode = #tpu.pipeline_mode<synchronous>, transform_indices = @transform_1, window_bounds = array<i64: 16, 128>}, {pipeline_mode = #tpu.pipeline_mode<synchronous>, transform_indices = @transform_2, window_bounds = array<i64: 1, 128>}, {pipeline_mode = #tpu.pipeline_mode<synchronous>, transform_indices = @transform_3, window_bounds = array<i64: 128, 128>}, {pipeline_mode = #tpu.pipeline_mode<synchronous>, transform_indices = @transform_4, window_bounds = array<i64: 1, 128>}, {pipeline_mode = #tpu.pipeline_mode<synchronous>, transform_indices = @transform_5, window_bounds = array<i64: 1, 128>}, {pipeline_mode = #tpu.pipeline_mode<synchronous>, transform_indices = @transform_6, window_bounds = array<i64: 1, 1>}, {transform_indices = @transform_7, window_bounds = array<i64: 1, 128>}]} {
    %c0 = arith.constant 0 : index
    %c0_0 = arith.constant 0 : index
    %0 = vector.load %arg1[%c0, %c0_0] : memref<128x16xbf16, #tpu.memory_space<vmem>>, vector<128x16xbf16>
    %c0_1 = arith.constant 0 : index
    %c0_2 = arith.constant 0 : index
    %1 = vector.load %arg2[%c0_1, %c0_2] : memref<16x128xbf16, #tpu.memory_space<vmem>>, vector<16x128xbf16>
    %cst = arith.constant dense<0.000000e+00> : vector<128x128xf32>
    %2 = tpu.matmul %0, %1, %cst {dimension_numbers = #tpu.dot_dimension_numbers<[1], [0], [0], [1], [0, 0, 1, 1], [], []>} : vector<128x16xbf16>, vector<16x128xbf16>, vector<128x128xf32> -> vector<128x128xf32>
    %c0_3 = arith.constant 0 : index
    %c0_4 = arith.constant 0 : index
    %3 = vector.load %arg3[%c0_3, %c0_4] : memref<1x128xf32, #tpu.memory_space<vmem>>, vector<1x128xf32>
    %4 = vector.broadcast %3 : vector<1x128xf32> to vector<128x128xf32>
    %5 = arith.addf %2, %4 : vector<128x128xf32>
    %cst_5 = arith.constant 0.000000e+00 : f32
    %6 = vector.broadcast %cst_5 : f32 to vector<128x128xf32>
    %7 = arith.maximumf %5, %6 : vector<128x128xf32>
    %8 = arith.truncf %7 : vector<128x128xf32> to vector<128x128xbf16>
    %c0_6 = arith.constant 0 : index
    %c0_7 = arith.constant 0 : index
    %9 = vector.load %arg4[%c0_6, %c0_7] : memref<128x128xbf16, #tpu.memory_space<vmem>>, vector<128x128xbf16>
    %cst_8 = arith.constant dense<0.000000e+00> : vector<128x128xf32>
    %10 = tpu.matmul %8, %9, %cst_8 {dimension_numbers = #tpu.dot_dimension_numbers<[1], [0], [0], [1], [0, 0, 1, 1], [], []>} : vector<128x128xbf16>, vector<128x128xbf16>, vector<128x128xf32> -> vector<128x128xf32>
    %c0_9 = arith.constant 0 : index
    %c0_10 = arith.constant 0 : index
    %11 = vector.load %arg5[%c0_9, %c0_10] : memref<1x128xf32, #tpu.memory_space<vmem>>, vector<1x128xf32>
    %12 = vector.broadcast %11 : vector<1x128xf32> to vector<128x128xf32>
    %13 = arith.addf %10, %12 : vector<128x128xf32>
    %cst_11 = arith.constant 0.000000e+00 : f32
    %14 = vector.broadcast %cst_11 : f32 to vector<128x128xf32>
    %15 = arith.maximumf %13, %14 : vector<128x128xf32>
    %c0_12 = arith.constant 0 : index
    %c0_13 = arith.constant 0 : index
    %16 = vector.load %arg6[%c0_12, %c0_13] : memref<1x128xbf16, #tpu.memory_space<vmem>>, vector<1x128xbf16>
    %17 = arith.truncf %15 : vector<128x128xf32> to vector<128x128xbf16>
    %cst_14 = arith.constant dense<0.000000e+00> : vector<1x128xf32>
    %18 = tpu.matmul %16, %17, %cst_14 {dimension_numbers = #tpu.dot_dimension_numbers<[1], [1], [0], [0], [0, 0, 1, 0], [], []>} : vector<1x128xbf16>, vector<128x128xbf16>, vector<1x128xf32> -> vector<1x128xf32>
    %c0_15 = arith.constant 0 : index
    %c0_16 = arith.constant 0 : index
    %19 = vector.load %arg7[%c0_15, %c0_16] : memref<1x1xf32, #tpu.memory_space<vmem>>, vector<1x1xf32>
    %20 = vector.broadcast %19 : vector<1x1xf32> to vector<1x128xf32>
    %21 = arith.addf %18, %20 : vector<1x128xf32>
    %c0_17 = arith.constant 0 : index
    %c0_18 = arith.constant 0 : index
    %22 = vector.load %arg8[%c0_17, %c0_18] : memref<1x128xf32, #tpu.memory_space<vmem>>, vector<1x128xf32>
    tpu.vector_store %arg8[%c0_17, %c0_18], %21 {strides = array<i32>} : memref<1x128xf32, #tpu.memory_space<vmem>>, vector<1x128xf32>,
    return
  }
  func.func @transform_0(%arg0: i32) -> (i32, i32) {
    %c0_i32 = arith.constant 0 : i32
    %c0_i32_0 = arith.constant 0 : i32
    return %arg0, %c0_i32 : i32, i32
  }
  func.func @transform_1(%arg0: i32) -> (i32, i32) {
    %c0_i32 = arith.constant 0 : i32
    %c0_i32_0 = arith.constant 0 : i32
    %c0_i32_1 = arith.constant 0 : i32
    return %c0_i32, %c0_i32_0 : i32, i32
  }
  func.func @transform_2(%arg0: i32) -> (i32, i32) {
    %c0_i32 = arith.constant 0 : i32
    %c0_i32_0 = arith.constant 0 : i32
    %c0_i32_1 = arith.constant 0 : i32
    return %c0_i32, %c0_i32_0 : i32, i32
  }
  func.func @transform_3(%arg0: i32) -> (i32, i32) {
    %c0_i32 = arith.constant 0 : i32
    %c0_i32_0 = arith.constant 0 : i32
    %c0_i32_1 = arith.constant 0 : i32
    return %c0_i32, %c0_i32_0 : i32, i32
  }
  func.func @transform_4(%arg0: i32) -> (i32, i32) {
    %c0_i32 = arith.constant 0 : i32
    %c0_i32_0 = arith.constant 0 : i32
    %c0_i32_1 = arith.constant 0 : i32
    return %c0_i32, %c0_i32_0 : i32, i32
  }
  func.func @transform_5(%arg0: i32) -> (i32, i32) {
    %c0_i32 = arith.constant 0 : i32
    %c0_i32_0 = arith.constant 0 : i32
    %c0_i32_1 = arith.constant 0 : i32
    return %c0_i32, %c0_i32_0 : i32, i32
  }
  func.func @transform_6(%arg0: i32) -> (i32, i32) {
    %c0_i32 = arith.constant 0 : i32
    %c0_i32_0 = arith.constant 0 : i32
    %c0_i32_1 = arith.constant 0 : i32
    return %c0_i32, %c0_i32_0 : i32, i32
  }
  func.func @transform_7(%arg0: i32) -> (i32, i32) {
    %c0_i32 = arith.constant 0 : i32
    %c0_i32_0 = arith.constant 0 : i32
    return %c0_i32, %arg0 : i32, i32
  }
}

</mosaic_0001>

<bundles_post_ra>
// kernel: tpu_custom_call.1
= control target key start
LH: loop header
LB: loop body
LE: loop exit
PB: predicated region body
PF: predicated region fallthrough
CT: control target
= control target key end

     0   :  { %s623_s0 = inlined_call_operand.vmem [shape: bf16[128,16], index: 0, kind: input, shape index: {}]   ;;  %s624_s1 = inlined_call_operand.vmem [shape: bf16[16,128], index: 1, kind: input, shape index: {}]   ;;  %s625_s2 = inlined_call_operand.vmem [shape: f32[1,128], index: 2, kind: input, shape index: {}]   ;;  %s626_s3 = inlined_call_operand.vmem [shape: bf16[128,128], index: 3, kind: input, shape index: {}]   ;;  %s627_s4 = inlined_call_operand.vmem [shape: f32[1,128], index: 4, kind: input, shape index: {}]   ;;  %s628_s5 = inlined_call_operand.vmem [shape: bf16[1,128], index: 5, kind: input, shape index: {}]   ;;  %s629_s6 = inlined_call_operand.<no memory space> [shape: f32[1,1], index: 6, kind: input, shape index: {}]   ;;  %s630_s7 = inlined_call_operand.hbm [shape: f32[1,128], index: 7, kind: output, shape index: {}]  }
   0x1   :  { %v12_v0 = vstv %s629_s6 }
   0x2   :  { %13 = vst [vmem:[#allocation2] sm:$0x1] %v12_v0 }
   0x3   :  { %v459_v1 = vld [vmem:[%s624_s1] sm:$0xff]  ;;  %vm98_vm0 = vcmask 130048  }
   0x4   :  { %v451_v2 = vld [vmem:[%s623_s0] sm:$0xff]  ;;  %130 = vmatpush.bf16.msra.mxu0 %v459_v1 }
   0x5   :  { %14 = vsyncpa [#allocation4], 0  ;;  %v452_v3 = vld [vmem:[%s623_s0 + $0x8] sm:$0xff]  ;;  %v453_v4 = vld [vmem:[%s623_s0 + $0x10] sm:$0xff]  ;;  %s508_s12 = smov [#allocation3]   ;;  %s366_s16 = sshll.u32 %s630_s7, 4  ;;  %s367_s16 = int_to_ptr.hbm [resolvable:$true] %s366_s16 }
   0x6   :  { %v454_v5 = vld [vmem:[%s623_s0 + $0x18] sm:$0xff]  ;;  %v455_v6 = vld [vmem:[%s623_s0 + $0x20] sm:$0xff]  ;;  %v456_v8 = vld [vmem:[%s623_s0 + $0x28] sm:$0xff]  ;;  %s364_s13 = sshll.u32 %s508_s12, 4  ;;  %s365_s13 = int_to_ptr.vmem [resolvable:$true] %s364_s13 }
   0x7   :  { %411 = vmatmul.msk.bf16.vlgmr.msra.gmra.mxu0 %vm98_vm0, %v451_v2  ;;  %v467_v7 = vld [vmem:[%s626_s3 + $0x38] sm:$0xff]  ;;  %v466_v9 = vld [vmem:[%s626_s3 + $0x30] sm:$0xff]  ;;  %v465_v10 = vld [vmem:[%s626_s3 + $0x28] sm:$0xff] }
   0x8   :  { %264 = vmatpush.bf16.msra.mxu1 %v467_v7  ;;  %468 = vmatpush.bf16.msra.mxu3 %v467_v7  ;;  %v464_v11 = vld [vmem:[%s626_s3 + $0x20] sm:$0xff]  ;;  %v463_v12 = vld [vmem:[%s626_s3 + $0x18] sm:$0xff]  ;;  %v457_v13 = vld [vmem:[%s623_s0 + $0x30] sm:$0xff] }
   0x9   :  { %v462_v14 = vld [vmem:[%s626_s3 + $0x10] sm:$0xff]  ;;  %v461_v15 = vld [vmem:[%s626_s3 + $0x8] sm:$0xff]  ;;  %v460_v16 = vld [vmem:[%s626_s3] sm:$0xff] }
   0xa   :  { %v458_v17 = vld [vmem:[%s623_s0 + $0x38] sm:$0xff]  ;;  %v479_v19 = vld [vmem:[%s625_s2] ss:$0 sm:$0xff] }
   0xc   :  { %265 = vmatpush.bf16.msra.mxu1 %v466_v9  ;;  %469 = vmatpush.bf16.msra.mxu3 %v466_v9 }
  0x10   :  { %266 = vmatpush.bf16.msra.mxu1 %v465_v10  ;;  %470 = vmatpush.bf16.msra.mxu3 %v465_v10 }
  0x14   :  { %267 = vmatpush.bf16.msra.mxu1 %v464_v11  ;;  %471 = vmatpush.bf16.msra.mxu3 %v464_v11 }
  0x17   :  { %412 = vmatmul.msk.bf16.gmra.mxu0 %vm98_vm0, %v452_v3 }
  0x18   :  { %268 = vmatpush.bf16.msra.mxu1 %v463_v12  ;;  %472 = vmatpush.bf16.msra.mxu3 %v463_v12  ;;  %v480_v12 = vld [vmem:[%s627_s4] ss:$0 sm:$0xff] }
  0x1c   :  { %269 = vmatpush.bf16.msra.mxu1 %v462_v14  ;;  %473 = vmatpush.bf16.msra.mxu3 %v462_v14 }
  0x20   :  { %270 = vmatpush.bf16.msra.mxu1 %v461_v15  ;;  %474 = vmatpush.bf16.msra.mxu3 %v461_v15 }
  0x24   :  { %271 = vmatpush.bf16.msra.mxu1 %v460_v16  ;;  %475 = vmatpush.bf16.msra.mxu3 %v460_v16 }
  0x27   :  { %413 = vmatmul.msk.bf16.gmra.mxu0 %vm98_vm0, %v453_v4 }
  0x37   :  { %414 = vmatmul.msk.bf16.gmra.mxu0 %vm98_vm0, %v454_v5 }
  0x47   :  { %415 = vmatmul.msk.bf16.gmra.mxu0 %vm98_vm0, %v455_v6 }
  0x57   :  { %416 = vmatmul.msk.bf16.gmra.mxu0 %vm98_vm0, %v456_v8 }
  0x67   :  { %417 = vmatmul.msk.bf16.gmra.mxu0 %vm98_vm0, %v457_v13 }
  0x77   :  { %418 = vmatmul.msk.bf16.gmra.mxu0 %vm98_vm0, %v458_v17 }
  0x84   :  { %v132_v18 = vpop.f32.mrf.mxu0 }
  0x85   :  { %v133_v20 = vadd.f32 %v479_v19, %v132_v18 }
  0x87   :  { %v172_v23 = vmax.f32 %v133_v20, 0.0 }
  0x8c   :  { %v134_v21 = vpop.f32.mrf.mxu0 }
  0x8d   :  { %v135_v22 = vadd.f32 %v479_v19, %v134_v21 }
  0x8f   :  { %v173_v24 = vmax.f32 %v135_v22, 0.0 }
  0x91   :  { %v188_v25 = vpack.c.bf16 %v173_v24, %v172_v23 }
  0x93   :  { %272 = vmatmul.bf16.vlgmr.msra.gmra.mxu1 %v188_v25 }
  0x94   :  { %v137_v26 = vpop.f32.mrf.mxu0 }
  0x95   :  { %v138_v27 = vadd.f32 %v479_v19, %v137_v26 }
  0x97   :  { %v174_v30 = vmax.f32 %v138_v27, 0.0 }
  0x9c   :  { %v139_v28 = vpop.f32.mrf.mxu0 }
  0x9d   :  { %v140_v29 = vadd.f32 %v479_v19, %v139_v28 }
  0x9f   :  { %v175_v31 = vmax.f32 %v140_v29, 0.0 }
  0xa1   :  { %v189_v32 = vpack.c.bf16 %v175_v31, %v174_v30 }
  0xa3   :  { %277 = vmatmul.bf16.gmra.mxu1 %v189_v32 }
  0xa4   :  { %v142_v33 = vpop.f32.mrf.mxu0 }
  0xa5   :  { %v143_v34 = vadd.f32 %v479_v19, %v142_v33 }
  0xa7   :  { %v176_v37 = vmax.f32 %v143_v34, 0.0 }
  0xac   :  { %v144_v35 = vpop.f32.mrf.mxu0 }
  0xad   :  { %v145_v36 = vadd.f32 %v479_v19, %v144_v35 }
  0xaf   :  { %v177_v38 = vmax.f32 %v145_v36, 0.0 }
  0xb1   :  { %v190_v39 = vpack.c.bf16 %v177_v38, %v176_v37 }
  0xb3   :  { %282 = vmatmul.bf16.gmra.mxu1 %v190_v39 }
  0xb4   :  { %v147_v40 = vpop.f32.mrf.mxu0 }
  0xb5   :  { %v148_v41 = vadd.f32 %v479_v19, %v147_v40 }
  0xb7   :  { %v178_v44 = vmax.f32 %v148_v41, 0.0 }
  0xbc   :  { %v149_v42 = vpop.f32.mrf.mxu0 }
  0xbd   :  { %v150_v43 = vadd.f32 %v479_v19, %v149_v42 }
  0xbf   :  { %v179_v45 = vmax.f32 %v150_v43, 0.0 }
  0xc1   :  { %v191_v46 = vpack.c.bf16 %v179_v45, %v178_v44 }
  0xc3   :  { %287 = vmatmul.bf16.gmra.mxu1 %v191_v46 }
  0xc4   :  { %v152_v47 = vpop.f32.mrf.mxu0 }
  0xc5   :  { %v153_v48 = vadd.f32 %v479_v19, %v152_v47 }
  0xc7   :  { %v180_v51 = vmax.f32 %v153_v48, 0.0 }
  0xcc   :  { %v154_v49 = vpop.f32.mrf.mxu0 }
  0xcd   :  { %v155_v50 = vadd.f32 %v479_v19, %v154_v49 }
  0xcf   :  { %v181_v52 = vmax.f32 %v155_v50, 0.0 }
  0xd1   :  { %v192_v53 = vpack.c.bf16 %v181_v52, %v180_v51 }
  0xd3   :  { %292 = vmatmul.bf16.gmra.mxu1 %v192_v53 }
  0xd4   :  { %v157_v54 = vpop.f32.mrf.mxu0 }
  0xd5   :  { %v158_v55 = vadd.f32 %v479_v19, %v157_v54 }
  0xd7   :  { %v182_v58 = vmax.f32 %v158_v55, 0.0 }
  0xdc   :  { %v159_v56 = vpop.f32.mrf.mxu0 }
  0xdd   :  { %v160_v57 = vadd.f32 %v479_v19, %v159_v56 }
  0xdf   :  { %v183_v59 = vmax.f32 %v160_v57, 0.0 }
  0xe1   :  { %v193_v60 = vpack.c.bf16 %v183_v59, %v182_v58 }
  0xe3   :  { %297 = vmatmul.bf16.vlgmr.msra.gmra.mxu3 %v193_v60 }
  0xe4   :  { %v162_v61 = vpop.f32.mrf.mxu0 }
  0xe5   :  { %v163_v62 = vadd.f32 %v479_v19, %v162_v61 }
  0xe7   :  { %v184_v1 = vmax.f32 %v163_v62, 0.0 }
  0xec   :  { %v164_v63 = vpop.f32.mrf.mxu0 }
  0xed   :  { %v165_v0 = vadd.f32 %v479_v19, %v164_v63 }
  0xef   :  { %v185_v2 = vmax.f32 %v165_v0, 0.0  ;;  %v338_v0 = vld [vmem:[#allocation2] sm:$0x1] }
  0xf1   :  { %v194_v3 = vpack.c.bf16 %v185_v2, %v184_v1  ;;  %v507_v2 = vmov 0  }
  0xf2   :  { %478 = vset.pattern.permute.xlu0 %v507_v2 }
  0xf3   :  { %302 = vmatmul.bf16.gmra.mxu3 %v194_v3  ;;  %341 = vperm.xlu0 %478, %v338_v0  }
  0xf4   :  { %v167_v4 = vpop.f32.mrf.mxu0 }
  0xf5   :  { %v168_v5 = vadd.f32 %v479_v19, %v167_v4 }
  0xf7   :  { %v186_v8 = vmax.f32 %v168_v5, 0.0 }
  0xfc   :  { %v169_v6 = vpop.f32.mrf.mxu0 }
  0xfd   :  { %v170_v7 = vadd.f32 %v479_v19, %v169_v6  ;;  %v329_v6 = vld [vmem:[%s628_s5] sm:$0x1] }
  0xff   :  { %v187_v9 = vmax.f32 %v170_v7, 0.0 }
 0x101   :  { %v195_v10 = vpack.c.bf16 %v187_v9, %v186_v8 }
 0x103   :  { %307 = vmatmul.bf16.gmra.mxu3 %v195_v10 }
 0x110   :  { %v273_v11 = vpop.f32.mrf.mxu1 }
 0x111   :  { %v274_v13 = vadd.f32 %v480_v12, %v273_v11 }
 0x113   :  { %v313_v16 = vmax.f32 %v274_v13, 0.0 }
 0x118   :  { %v275_v14 = vpop.f32.mrf.mxu1 }
 0x119   :  { %v276_v15 = vadd.f32 %v480_v12, %v275_v14 }
 0x11b   :  { %v314_v17 = vmax.f32 %v276_v15, 0.0 }
 0x11d   :  { %v330_v18 = vpack.c.bf16 %v314_v17, %v313_v16 }
 0x120   :  { %v278_v20 = vpop.f32.mrf.mxu1 }
 0x121   :  { %v279_v21 = vadd.f32 %v480_v12, %v278_v20 }
 0x123   :  { %v315_v19 = vmax.f32 %v279_v21, 0.0 }
 0x128   :  { %v280_v22 = vpop.f32.mrf.mxu1 }
 0x129   :  { %v281_v23 = vadd.f32 %v480_v12, %v280_v22 }
 0x12b   :  { %v316_v24 = vmax.f32 %v281_v23, 0.0 }
 0x12d   :  { %v331_v25 = vpack.c.bf16 %v316_v24, %v315_v19 }
 0x130   :  { %v283_v27 = vpop.f32.mrf.mxu1 }
 0x131   :  { %v284_v1 = vadd.f32 %v480_v12, %v283_v27 }
 0x133   :  { %v317_v4 = vmax.f32 %v284_v1, 0.0 }
 0x138   :  { %v285_v30 = vpop.f32.mrf.mxu1 }
 0x139   :  { %v286_v62 = vadd.f32 %v480_v12, %v285_v30 }
 0x13b   :  { %v318_v3 = vmax.f32 %v286_v62, 0.0 }
 0x13d   :  { %v332_v5 = vpack.c.bf16 %v318_v3, %v317_v4 }
 0x140   :  { %v288_v32 = vpop.f32.mrf.mxu1 }
 0x141   :  { %v289_v59 = vadd.f32 %v480_v12, %v288_v32 }
 0x143   :  { %v319_v61 = vmax.f32 %v289_v59, 0.0 }
 0x148   :  { %v290_v34 = vpop.f32.mrf.mxu1 }
 0x149   :  { %v291_v57 = vadd.f32 %v480_v12, %v290_v34 }
 0x14b   :  { %v320_v60 = vmax.f32 %v291_v57, 0.0 }
 0x14d   :  { %v333_v63 = vpack.c.bf16 %v320_v60, %v319_v61 }
 0x150   :  { %v293_v43 = vpop.f32.mrf.mxu1 }
 0x151   :  { %v294_v54 = vadd.f32 %v480_v12, %v293_v43 }
 0x153   :  { %v321_v56 = vmax.f32 %v294_v54, 0.0 }
 0x158   :  { %v295_v50 = vpop.f32.mrf.mxu1 }
 0x159   :  { %v296_v52 = vadd.f32 %v480_v12, %v295_v50 }
 0x15b   :  { %v322_v55 = vmax.f32 %v296_v52, 0.0 }
 0x15d   :  { %v334_v58 = vpack.c.bf16 %v322_v55, %v321_v56 }
 0x165   :  { %v342_v7 = vpop.permute.xlu0 %341 }
 0x166   :  { %v298_v26 = vpop.f32.mrf.mxu3  ;;  %v344_v8 = vperm.slane %v342_v7, 0 }
 0x167   :  { %v299_v48 = vadd.f32 %v480_v12, %v298_v26 }
 0x169   :  { %v323_v51 = vmax.f32 %v299_v48, 0.0 }
 0x16e   :  { %v300_v28 = vpop.f32.mrf.mxu3 }
 0x16f   :  { %v301_v46 = vadd.f32 %v480_v12, %v300_v28 }
 0x171   :  { %v324_v49 = vmax.f32 %v301_v46, 0.0 }
 0x173   :  { %v335_v53 = vpack.c.bf16 %v324_v49, %v323_v51 }
 0x176   :  { %v303_v29 = vpop.f32.mrf.mxu3 }
 0x177   :  { %v304_v42 = vadd.f32 %v480_v12, %v303_v29 }
 0x179   :  { %v325_v45 = vmax.f32 %v304_v42, 0.0 }
 0x17e   :  { %v305_v31 = vpop.f32.mrf.mxu3 }
 0x17f   :  { %v306_v40 = vadd.f32 %v480_v12, %v305_v31 }
 0x181   :  { %v326_v44 = vmax.f32 %v306_v40, 0.0 }
 0x183   :  { %v336_v47 = vpack.c.bf16 %v326_v44, %v325_v45 }
 0x186   :  { %v308_v33 = vpop.f32.mrf.mxu3 }
 0x187   :  { %v309_v35 = vadd.f32 %v480_v12, %v308_v33 }
 0x189   :  { %v327_v38 = vmax.f32 %v309_v35, 0.0 }
 0x18e   :  { %v310_v36 = vpop.f32.mrf.mxu3 }
 0x18f   :  { %v311_v37 = vadd.f32 %v480_v12, %v310_v36 }
 0x191   :  { %v328_v39 = vmax.f32 %v311_v37, 0.0 }
 0x193   :  { %v337_v41 = vpack.c.bf16 %v328_v39, %v327_v38 }
 0x195   :  { %345 = vmatpush.bf16.xpose.msra.mxu2 %v337_v41 }
 0x19d   :  { %346 = vmatpush.bf16.xpose.msra.mxu2 %v336_v47 }
 0x1a5   :  { %347 = vmatpush.bf16.xpose.msra.mxu2 %v335_v53 }
 0x1ad   :  { %348 = vmatpush.bf16.xpose.msra.mxu2 %v334_v58 }
 0x1b5   :  { %349 = vmatpush.bf16.xpose.msra.mxu2 %v333_v63 }
 0x1bd   :  { %350 = vmatpush.bf16.xpose.msra.mxu2 %v332_v5 }
 0x1c5   :  { %351 = vmatpush.bf16.xpose.msra.mxu2 %v331_v25 }
 0x1cd   :  { %352 = vmatpush.bf16.xpose.msra.mxu2 %v330_v18 }
 0x1d4   :  { %353 = vmatmul.bf16.vlgmr.msra.gmra.mxu2 %v329_v6 }
 0x257   :  { %v354_v9 = vpop.f32.mrf.mxu2 }
 0x258   :  { %v355_v10 = vadd.f32 %v354_v9, %v344_v8 }
 0x25a   :  { %358 = vst [vmem:[#allocation3] sm:$0x1] %v355_v10 }
 0x25b   :  { %369 = dma.vmem_to_hbm [thread:$0]  %s365_s13, 16, %s367_s16, [#allocation4]  }
 0x25f   :  { %v356_v11 = vpop.f32.mrf.mxu2 }
 0x260   :  { %505 = dma.done.wait [#allocation4], 16  }
 0x261   :  { %506 = vsyncadd [#allocation4], 4294967280 }
 0x262   :  { %374 = vsyncpa [#allocation4], 1 }

</bundles_post_ra>
